<compile_context>
chip_gen: v7x
topology: tpu7x:2x2x1
jax: 0.10.0
libtpu: 0.0.40
codegen_flags: <defaults>
</compile_context>

<pallas_src>
import functools
import math

import jax
import jax.numpy as jnp
from jax import lax
from jax.experimental import pallas as pl
from jax.experimental.pallas import tpu as pltpu


def _round_up(x, m):
    return ((x + m - 1) // m) * m


def _bce_dice_kernel(x_ref, t_ref, out_ref,
                     bce_acc, inter_acc, psum_acc, tsum_acc,
                     *, d_total, n_total, smooth):
    step = pl.program_id(0)
    nt, dt = x_ref.shape

    @pl.when(step == 0)
    def _init():
        bce_acc[...] = jnp.zeros_like(bce_acc)
        inter_acc[...] = jnp.zeros_like(inter_acc)
        psum_acc[...] = jnp.zeros_like(psum_acc)
        tsum_acc[...] = jnp.zeros_like(tsum_acc)

    # Cast per-tile (inputs may be bf16 / int); accumulate in f32.
    x = x_ref[...].astype(jnp.float32)
    t = t_ref[...].astype(jnp.float32)

    # Mask lanes beyond the true feature size D (last tile may be padded).
    col = step * dt + lax.broadcasted_iota(jnp.int32, (nt, dt), 1)
    valid = col < d_total
    x = jnp.where(valid, x, 0.0)
    t = jnp.where(valid, t, 0.0)

    # One exp per element, reused for both the stable BCE term and the sigmoid.
    e = jnp.exp(-jnp.abs(x))
    # Stable BCE-with-logits: max(x, 0) - x*t + log(1 + exp(-|x|))
    bce_elem = jnp.maximum(x, 0.0) - x * t + jnp.log1p(e)
    r = 1.0 / (1.0 + e)                       # full-precision (dice tolerance)
    p = jnp.where(x >= 0.0, r, e * r)         # sigmoid(x)

    # Zero masked lanes' contributions (they'd add log 2 to BCE and 0.5 to p_sum).
    bce_elem = jnp.where(valid, bce_elem, 0.0)
    p = jnp.where(valid, p, 0.0)              # t already zeroed above

    # Pure-VPU accumulation; cross-lane reductions deferred to finalize.
    bce_acc[...] += bce_elem
    inter_acc[...] += p * t
    psum_acc[...] += p
    tsum_acc[...] += t

    @pl.when(step == pl.num_programs(0) - 1)
    def _finalize():
        bce = jnp.sum(bce_acc[...]) / float(n_total * d_total)
        inter = jnp.sum(inter_acc[...], axis=1, keepdims=True)   # (N, 1)
        p_sum = jnp.sum(psum_acc[...], axis=1, keepdims=True)    # (N, 1)
        t_sum = jnp.sum(tsum_acc[...], axis=1, keepdims=True)    # (N, 1)
        dice = (2.0 * inter + smooth) / (p_sum + t_sum + smooth)
        dice_loss = 1.0 - jnp.sum(dice) / float(n_total)
        out_ref[0, 0] = 0.5 * bce + dice_loss


def bce_dice_loss(logits, target, *, d_tile=None):
    """logits, target: (N, C, H, W) (any trailing shape). Returns scalar f32 loss."""
    n = logits.shape[0]
    d = math.prod(logits.shape[1:])
    x2d = logits.reshape(n, d)          # no dtype up-cast in the wrapper
    t2d = target.reshape(n, d)

    # Lane-dense tile: 4096 lanes by default (amortizes per-step overhead, and
    # 2 inputs x 2 pipeline buffers x N x d_tile x 4B stays far under the
    # 16/32 MiB scoped VMEM defaults on v5e / v6e / v7x for realistic N).
    if d_tile is None:
        d_tile = 4096
    d_tile = max(128, min(_round_up(d_tile, 128), _round_up(d, 128)))
    num_tiles = pl.cdiv(d, d_tile)

    kernel = functools.partial(
        _bce_dice_kernel, d_total=d, n_total=n, smooth=1e-05)

    # TODO(synk): on v7x, also shard the batch axis across the 2 TensorCores
    # ("parallel" N grid axis with per-core partial outputs combined outside).
    out = pl.pallas_call(
        kernel,
        out_shape=jax.ShapeDtypeStruct((1, 1), jnp.float32),
        grid_spec=pltpu.PrefetchScalarGridSpec(
            num_scalar_prefetch=0,
            grid=(num_tiles,),
            in_specs=[
                pl.BlockSpec((n, d_tile), lambda i: (0, i)),
                pl.BlockSpec((n, d_tile), lambda i: (0, i)),
            ],
            out_specs=pl.BlockSpec((1, 1), lambda i: (0, 0),
                                   memory_space=pltpu.SMEM),
            scratch_shapes=[
                pltpu.VMEM((n, d_tile), jnp.float32),   # bce partials
                pltpu.VMEM((n, d_tile), jnp.float32),   # intersection partials
                pltpu.VMEM((n, d_tile), jnp.float32),   # sigmoid-sum partials
                pltpu.VMEM((n, d_tile), jnp.float32),   # target-sum partials
            ],
        ),
        compiler_params=pltpu.CompilerParams(
            dimension_semantics=("arbitrary",),
        ),
    )(x2d, t2d)
    return out[0, 0]


def _reference(logits, target):
    # Pure-JAX reference of the PyTorch forward, for a sanity check.
    x = logits.astype(jnp.float32)
    t = target.astype(jnp.float32)
    bce_elem = jnp.maximum(x, 0.0) - x * t + jnp.log1p(jnp.exp(-jnp.abs(x)))
    bce = jnp.mean(bce_elem)
    p = jax.nn.sigmoid(x)
    n = x.shape[0]
    pf = p.reshape(n, -1)
    tf = t.reshape(n, -1)
    smooth = 1e-05
    dice = (2.0 * jnp.sum(pf * tf, axis=1) + smooth) / (
        jnp.sum(pf, axis=1) + jnp.sum(tf, axis=1) + smooth
    )
    dice_loss = 1.0 - jnp.sum(dice) / n
    return 0.5 * bce + dice_loss


if __name__ == "__main__":
    key = jax.random.PRNGKey(0)
    k1, k2, k3, k4 = jax.random.split(key, 4)

    # Case 1: NCHW (2, 4, 16, 16) -> D = 1024; d_tile=256 forces a 4-step grid
    # (exercises init / accumulate / finalize across grid steps).
    logits1 = jax.random.normal(k1, (2, 4, 16, 16), dtype=jnp.float32)
    target1 = (jax.random.uniform(k2, (2, 4, 16, 16)) > 0.5).astype(jnp.float32)
    loss1 = bce_dice_loss(logits1, target1, d_tile=256)
    jax.block_until_ready(loss1)
    ref1 = _reference(logits1, target1)
    assert jnp.allclose(loss1, ref1, atol=2e-5, rtol=2e-5), (loss1, ref1)

    # Case 2: D = 300 (not a multiple of the 256-lane tile) -> exercises lane masking.
    logits2 = jax.random.normal(k3, (2, 3, 10, 10), dtype=jnp.float32)
    target2 = (jax.random.uniform(k4, (2, 3, 10, 10)) > 0.5).astype(jnp.float32)
    loss2 = bce_dice_loss(logits2, target2, d_tile=256)
    jax.block_until_ready(loss2)
    ref2 = _reference(logits2, target2)
    assert jnp.allclose(loss2, ref2, atol=2e-5, rtol=2e-5), (loss2, ref2)

    print("KERNEL_OK")
</pallas_src>

<mosaic_0001>
module attributes {stable_mosaic.version = 11 : i64} {
  func.func @_bce_dice_kernel(%arg0: i32, %arg1: memref<2x256xf32, #tpu.memory_space<vmem>>, %arg2: memref<2x256xf32, #tpu.memory_space<vmem>>, %arg3: memref<1x1xf32, #tpu.memory_space<smem>>, %arg4: memref<2x256xf32, #tpu.memory_space<vmem>>, %arg5: memref<2x256xf32, #tpu.memory_space<vmem>>, %arg6: memref<2x256xf32, #tpu.memory_space<vmem>>, %arg7: memref<2x256xf32, #tpu.memory_space<vmem>>) attributes {dimension_semantics = [#tpu.dimension_semantics<arbitrary>], iteration_bounds = array<i64: 4>, scalar_prefetch = 0 : i64, scratch_operands = 4 : i64, tpu.core_type = #tpu.core_type<tc>, window_params = [{transform_indices = @transform_0, window_bounds = array<i64: 2, 256>}, {transform_indices = @transform_1, window_bounds = array<i64: 2, 256>}, {transform_indices = @transform_2, window_bounds = array<i64: 1, 1>}]} {
    %c0_i32 = arith.constant 0 : i32
    %0 = arith.cmpi eq, %arg0, %c0_i32 : i32
    %1 = arith.extui %0 : i1 to i32
    %c0_i32_0 = arith.constant 0 : i32
    %2 = arith.cmpi ne, %1, %c0_i32_0 : i32
    scf.if %2 {
      %cst_29 = arith.constant 0.000000e+00 : f32
      %53 = vector.broadcast %cst_29 : f32 to vector<2x256xf32>
      %c0_30 = arith.constant 0 : index
      %c0_31 = arith.constant 0 : index
      %54 = vector.load %arg4[%c0_30, %c0_31] : memref<2x256xf32, #tpu.memory_space<vmem>>, vector<2x256xf32>
      tpu.vector_store %arg4[%c0_30, %c0_31], %53 {strides = array<i32>} : memref<2x256xf32, #tpu.memory_space<vmem>>, vector<2x256xf32>,
      %cst_32 = arith.constant 0.000000e+00 : f32
      %55 = vector.broadcast %cst_32 : f32 to vector<2x256xf32>
      %c0_33 = arith.constant 0 : index
      %c0_34 = arith.constant 0 : index
      %56 = vector.load %arg5[%c0_33, %c0_34] : memref<2x256xf32, #tpu.memory_space<vmem>>, vector<2x256xf32>
      tpu.vector_store %arg5[%c0_33, %c0_34], %55 {strides = array<i32>} : memref<2x256xf32, #tpu.memory_space<vmem>>, vector<2x256xf32>,
      %cst_35 = arith.constant 0.000000e+00 : f32
      %57 = vector.broadcast %cst_35 : f32 to vector<2x256xf32>
      %c0_36 = arith.constant 0 : index
      %c0_37 = arith.constant 0 : index
      %58 = vector.load %arg6[%c0_36, %c0_37] : memref<2x256xf32, #tpu.memory_space<vmem>>, vector<2x256xf32>
      tpu.vector_store %arg6[%c0_36, %c0_37], %57 {strides = array<i32>} : memref<2x256xf32, #tpu.memory_space<vmem>>, vector<2x256xf32>,
      %cst_38 = arith.constant 0.000000e+00 : f32
      %59 = vector.broadcast %cst_38 : f32 to vector<2x256xf32>
      %c0_39 = arith.constant 0 : index
      %c0_40 = arith.constant 0 : index
      %60 = vector.load %arg7[%c0_39, %c0_40] : memref<2x256xf32, #tpu.memory_space<vmem>>, vector<2x256xf32>
      tpu.vector_store %arg7[%c0_39, %c0_40], %59 {strides = array<i32>} : memref<2x256xf32, #tpu.memory_space<vmem>>, vector<2x256xf32>,
    } else {
    }
    %c0 = arith.constant 0 : index
    %c0_1 = arith.constant 0 : index
    %3 = vector.load %arg1[%c0, %c0_1] : memref<2x256xf32, #tpu.memory_space<vmem>>, vector<2x256xf32>
    %c0_2 = arith.constant 0 : index
    %c0_3 = arith.constant 0 : index
    %4 = vector.load %arg2[%c0_2, %c0_3] : memref<2x256xf32, #tpu.memory_space<vmem>>, vector<2x256xf32>
    %c256_i32 = arith.constant 256 : i32
    %5 = arith.muli %arg0, %c256_i32 : i32
    %6 = tpu.iota {dimensions = array<i32: 1>} : vector<2x256xi32>
    %7 = vector.broadcast %5 : i32 to vector<2x256xi32>
    %8 = arith.addi %7, %6 : vector<2x256xi32>
    %c1024_i32 = arith.constant 1024 : i32
    %9 = vector.broadcast %c1024_i32 : i32 to vector<2x256xi32>
    %10 = arith.cmpi slt, %8, %9 : vector<2x256xi32>
    %cst = arith.constant 0.000000e+00 : f32
    %11 = vector.broadcast %cst : f32 to vector<2x256xf32>
    %12 = arith.select %10, %3, %11 : vector<2x256xi1>, vector<2x256xf32>
    %cst_4 = arith.constant 0.000000e+00 : f32
    %13 = vector.broadcast %cst_4 : f32 to vector<2x256xf32>
    %14 = arith.select %10, %4, %13 : vector<2x256xi1>, vector<2x256xf32>
    %15 = math.absf %12 : vector<2x256xf32>
    %cst_5 = arith.constant 0.000000e+00 : f32
    %16 = vector.broadcast %cst_5 : f32 to vector<2x256xf32>
    %17 = arith.subf %16, %15 : vector<2x256xf32>
    %18 = math.exp %17 : vector<2x256xf32>
    %cst_6 = arith.constant 0.000000e+00 : f32
    %19 = vector.broadcast %cst_6 : f32 to vector<2x256xf32>
    %20 = arith.maximumf %12, %19 : vector<2x256xf32>
    %21 = arith.mulf %12, %14 : vector<2x256xf32>
    %22 = arith.subf %20, %21 : vector<2x256xf32>
    %23 = math.log1p %18 : vector<2x256xf32>
    %24 = arith.addf %22, %23 : vector<2x256xf32>
    %cst_7 = arith.constant 1.000000e+00 : f32
    %25 = vector.broadcast %cst_7 : f32 to vector<2x256xf32>
    %26 = arith.addf %25, %18 : vector<2x256xf32>
    %cst_8 = arith.constant 1.000000e+00 : f32
    %27 = vector.broadcast %cst_8 : f32 to vector<2x256xf32>
    %28 = arith.divf %27, %26 : vector<2x256xf32>
    %cst_9 = arith.constant 0.000000e+00 : f32
    %29 = vector.broadcast %cst_9 : f32 to vector<2x256xf32>
    %30 = arith.cmpf oge, %12, %29 : vector<2x256xf32>
    %31 = arith.mulf %18, %28 : vector<2x256xf32>
    %32 = arith.select %30, %28, %31 : vector<2x256xi1>, vector<2x256xf32>
    %cst_10 = arith.constant 0.000000e+00 : f32
    %33 = vector.broadcast %cst_10 : f32 to vector<2x256xf32>
    %34 = arith.select %10, %24, %33 : vector<2x256xi1>, vector<2x256xf32>
    %cst_11 = arith.constant 0.000000e+00 : f32
    %35 = vector.broadcast %cst_11 : f32 to vector<2x256xf32>
    %36 = arith.select %10, %32, %35 : vector<2x256xi1>, vector<2x256xf32>
    %c0_12 = arith.constant 0 : index
    %c0_13 = arith.constant 0 : index
    %37 = vector.load %arg4[%c0_12, %c0_13] : memref<2x256xf32, #tpu.memory_space<vmem>>, vector<2x256xf32>
    %38 = arith.addf %37, %34 : vector<2x256xf32>
    %c0_14 = arith.constant 0 : index
    %c0_15 = arith.constant 0 : index
    %39 = vector.load %arg4[%c0_14, %c0_15] : memref<2x256xf32, #tpu.memory_space<vmem>>, vector<2x256xf32>
    tpu.vector_store %arg4[%c0_14, %c0_15], %38 {strides = array<i32>} : memref<2x256xf32, #tpu.memory_space<vmem>>, vector<2x256xf32>,
    %c0_16 = arith.constant 0 : index
    %c0_17 = arith.constant 0 : index
    %40 = vector.load %arg5[%c0_16, %c0_17] : memref<2x256xf32, #tpu.memory_space<vmem>>, vector<2x256xf32>
    %41 = arith.mulf %36, %14 : vector<2x256xf32>
    %42 = arith.addf %40, %41 : vector<2x256xf32>
    %c0_18 = arith.constant 0 : index
    %c0_19 = arith.constant 0 : index
    %43 = vector.load %arg5[%c0_18, %c0_19] : memref<2x256xf32, #tpu.memory_space<vmem>>, vector<2x256xf32>
    tpu.vector_store %arg5[%c0_18, %c0_19], %42 {strides = array<i32>} : memref<2x256xf32, #tpu.memory_space<vmem>>, vector<2x256xf32>,
    %c0_20 = arith.constant 0 : index
    %c0_21 = arith.constant 0 : index
    %44 = vector.load %arg6[%c0_20, %c0_21] : memref<2x256xf32, #tpu.memory_space<vmem>>, vector<2x256xf32>
    %45 = arith.addf %44, %36 : vector<2x256xf32>
    %c0_22 = arith.constant 0 : index
    %c0_23 = arith.constant 0 : index
    %46 = vector.load %arg6[%c0_22, %c0_23] : memref<2x256xf32, #tpu.memory_space<vmem>>, vector<2x256xf32>
    tpu.vector_store %arg6[%c0_22, %c0_23], %45 {strides = array<i32>} : memref<2x256xf32, #tpu.memory_space<vmem>>, vector<2x256xf32>,
    %c0_24 = arith.constant 0 : index
    %c0_25 = arith.constant 0 : index
    %47 = vector.load %arg7[%c0_24, %c0_25] : memref<2x256xf32, #tpu.memory_space<vmem>>, vector<2x256xf32>
    %48 = arith.addf %47, %14 : vector<2x256xf32>
    %c0_26 = arith.constant 0 : index
    %c0_27 = arith.constant 0 : index
    %49 = vector.load %arg7[%c0_26, %c0_27] : memref<2x256xf32, #tpu.memory_space<vmem>>, vector<2x256xf32>
    tpu.vector_store %arg7[%c0_26, %c0_27], %48 {strides = array<i32>} : memref<2x256xf32, #tpu.memory_space<vmem>>, vector<2x256xf32>,
    %c3_i32 = arith.constant 3 : i32
    %50 = arith.cmpi eq, %arg0, %c3_i32 : i32
    %51 = arith.extui %50 : i1 to i32
    %c0_i32_28 = arith.constant 0 : i32
    %52 = arith.cmpi ne, %51, %c0_i32_28 : i32
    scf.if %52 {
      %c0_29 = arith.constant 0 : index
      %c0_30 = arith.constant 0 : index
      %53 = vector.load %arg4[%c0_29, %c0_30] : memref<2x256xf32, #tpu.memory_space<vmem>>, vector<2x256xf32>
      %54 = vector.shape_cast %53 : vector<2x256xf32> to vector<1x2x256xf32>
      %cst_31 = arith.constant dense<0.000000e+00> : vector<1xf32>
      %55 = vector.multi_reduction <add>, %54, %cst_31 [1, 2] : vector<1x2x256xf32> to vector<1xf32>
      %56 = vector.shape_cast %55 : vector<1xf32> to vector<1x1x1xf32>
      %57 = vector.extract %56[0, 0, 0] : f32 from vector<1x1x1xf32>
      %cst_32 = arith.constant 2.048000e+03 : f32
      %58 = arith.divf %57, %cst_32 : f32
      %c0_33 = arith.constant 0 : index
      %c0_34 = arith.constant 0 : index
      %59 = vector.load %arg5[%c0_33, %c0_34] : memref<2x256xf32, #tpu.memory_space<vmem>>, vector<2x256xf32>
      %cst_35 = arith.constant dense<0.000000e+00> : vector<2xf32>
      %60 = vector.multi_reduction <add>, %59, %cst_35 [1] : vector<2x256xf32> to vector<2xf32>
      %61 = vector.shape_cast %60 : vector<2xf32> to vector<2x1xf32>
      %c0_36 = arith.constant 0 : index
      %c0_37 = arith.constant 0 : index
      %62 = vector.load %arg6[%c0_36, %c0_37] : memref<2x256xf32, #tpu.memory_space<vmem>>, vector<2x256xf32>
      %cst_38 = arith.constant dense<0.000000e+00> : vector<2xf32>
      %63 = vector.multi_reduction <add>, %62, %cst_38 [1] : vector<2x256xf32> to vector<2xf32>
      %64 = vector.shape_cast %63 : vector<2xf32> to vector<2x1xf32>
      %c0_39 = arith.constant 0 : index
      %c0_40 = arith.constant 0 : index
      %65 = vector.load %arg7[%c0_39, %c0_40] : memref<2x256xf32, #tpu.memory_space<vmem>>, vector<2x256xf32>
      %cst_41 = arith.constant dense<0.000000e+00> : vector<2xf32>
      %66 = vector.multi_reduction <add>, %65, %cst_41 [1] : vector<2x256xf32> to vector<2xf32>
      %67 = vector.shape_cast %66 : vector<2xf32> to vector<2x1xf32>
      %cst_42 = arith.constant 2.000000e+00 : f32
      %68 = vector.broadcast %cst_42 : f32 to vector<2x1xf32>
      %69 = arith.mulf %68, %61 : vector<2x1xf32>
      %cst_43 = arith.constant 9.99999974E-6 : f32
      %70 = vector.broadcast %cst_43 : f32 to vector<2x1xf32>
      %71 = arith.addf %69, %70 : vector<2x1xf32>
      %72 = arith.addf %64, %67 : vector<2x1xf32>
      %cst_44 = arith.constant 9.99999974E-6 : f32
      %73 = vector.broadcast %cst_44 : f32 to vector<2x1xf32>
      %74 = arith.addf %72, %73 : vector<2x1xf32>
      %75 = arith.divf %71, %74 : vector<2x1xf32>
      %76 = vector.shape_cast %75 : vector<2x1xf32> to vector<1x2x1xf32>
      %cst_45 = arith.constant dense<0.000000e+00> : vector<1xf32>
      %77 = vector.multi_reduction <add>, %76, %cst_45 [1, 2] : vector<1x2x1xf32> to vector<1xf32>
      %78 = vector.shape_cast %77 : vector<1xf32> to vector<1x1x1xf32>
      %79 = vector.extract %78[0, 0, 0] : f32 from vector<1x1x1xf32>
      %cst_46 = arith.constant 2.000000e+00 : f32
      %80 = arith.divf %79, %cst_46 : f32
      %cst_47 = arith.constant 1.000000e+00 : f32
      %81 = arith.subf %cst_47, %80 : f32
      %cst_48 = arith.constant 5.000000e-01 : f32
      %82 = arith.mulf %cst_48, %58 : f32
      %83 = arith.addf %82, %81 : f32
      %c0_49 = arith.constant 0 : index
      %c0_50 = arith.constant 0 : index
      %84 = memref.load %arg3[%c0_49, %c0_50] : memref<1x1xf32, #tpu.memory_space<smem>>
      memref.store %83, %arg3[%c0_49, %c0_50] : memref<1x1xf32, #tpu.memory_space<smem>>
    } else {
    }
    return
  }
  func.func @transform_0(%arg0: i32) -> (i32, i32) {
    %c0_i32 = arith.constant 0 : i32
    %c0_i32_0 = arith.constant 0 : i32
    return %c0_i32, %arg0 : i32, i32
  }
  func.func @transform_1(%arg0: i32) -> (i32, i32) {
    %c0_i32 = arith.constant 0 : i32
    %c0_i32_0 = arith.constant 0 : i32
    return %c0_i32, %arg0 : i32, i32
  }
  func.func @transform_2(%arg0: i32) -> (i32, i32) {
    %c0_i32 = arith.constant 0 : i32
    %c0_i32_0 = arith.constant 0 : i32
    %c0_i32_1 = arith.constant 0 : i32
    return %c0_i32, %c0_i32_0 : i32, i32
  }
}

</mosaic_0001>

<bundles_post_ra>
// kernel: tpu_custom_call.1
= control target key start
LH: loop header
LB: loop body
LE: loop exit
PB: predicated region body
PF: predicated region fallthrough
CT: control target
= control target key end

     0   :  { %7 = vsyncpa [#allocation7], 0  ;;  %s963_s0 = inlined_call_operand.hbm [shape: f32[2,1024], index: 0, kind: input, shape index: {}]   ;;  %s964_s1 = inlined_call_operand.hbm [shape: f32[2,1024], index: 1, kind: input, shape index: {}]   ;;  %s965_s2 = inlined_call_operand.hbm [shape: f32[1,1], index: 2, kind: output, shape index: {}]  }
   0x1   :  { %9 = vsyncpa [#allocation7 + $0x1], 0 }
   0x2   :  { %10 = vsyncpa [#allocation10], 0 }
   0x3   :  { %12 = vsyncpa [#allocation10 + $0x1], 0 }
   0x4   :  { %13 = vsyncpa [#allocation8], 0  ;;  %s762_s9 = smov 0   ;;  %s764_s10 = smov 0  }
   0x5   :  { %s766_s11 = smov 0   ;;  %s768_s12 = smov 0  }
   0x6 LB: > { %s781_s13 = sadd.s32 4294967295, %s740_s12   ;;  %s784_s14 = sadd.s32 1, %s740_s12   ;;  %s740_s12 = sphi %s768_s12, %s977_s12   ;;  %s736_s11 = sphi %s766_s11, %s976_s11   ;;  %s732_s10 = sphi %s764_s10, %s975_s10   ;;  %s728_s9 = sphi %s762_s9, %s974_s9  }
   0x7   : > { %s23_s15 = ssub.s32 %s740_s12, %s784_s14  ;;  %s26_s16 = sadd.s32 1, %s736_s11 }
   0x8   : > { %p24_p0 = scmp.eq.s32.totalorder %s23_s15, 0  ;;  %p33_p1 = scmp.ne.s32.totalorder %s736_s11, %s732_s10 }
   0x9   : > { %p34_p2 = scmp.eq.s32.totalorder %s740_s12, 0  ;;  %p39_p3 = scmp.ne.s32.totalorder %s732_s10, %s728_s9 }
   0xa   : > { %s794_s17 = scalar_select %p24_p0, %s736_s11, %s26_s16  }
   0xb   : > { %p35_p4 = por %p34_p2, %p33_p1  ;;  %p40_p5 = scmp.eq.s32.totalorder %s781_s13, 0 }
   0xc   : > { %p574_p6 = scmp.lt.s32.totalorder %s740_s12, 4  ;;  %s803_s19 = sand.u32 1, %s736_s11  }
   0xd   : > { %p798_p7 = por %p40_p5, %p39_p3  ;;  %s531_s20 = sshll.u32 %s803_s19, 2 }
   0xe   : > { %s553_s21 = sshll.u32 %s740_s12, 6  ;;  %s114_s25 = scalar_lea.vmem [#allocation6], %s531_s20 }
   0xf   : > { %s967_s18 = scalar_select %p798_p7, 1, 0 }
  0x10   : > { %s812_s24 = scalar_lea.hbm %s963_s0, %s553_s21  ;;  %s122_s26 = sshll.u32 %s114_s25, 4  ;;  %s816_s26 = int_to_ptr.vmem [resolvable:$true] %s122_s26 }
  0x11   : > { %p818_p8 = pnand %p574_p6, %p35_p4  ;;  %s111_s28 = scalar_lea.sflag [#allocation7], %s803_s19 }
  0x12   : > { %s626_s29 = scalar_lea.hbm %s812_s24, 64  ;;  %s631_s4 = scalar_lea.hbm %s963_s0, 256 }
  0x13   : > { %p627_p11 = scmp.ne.s32.totalorder %s812_s24, %s626_s29  ;;  %p628_p12 = pneg %p818_p8 }
  0x14   : > { %p632_p1 = scmp.lt.u32.totalorder %s812_s24, %s963_s0  ;;  %p633_p2 = scmp.lt.u32.totalorder %s631_s4, %s626_s29 }
  0x15   : > { %p629_p13 = pnand %p628_p12, %p627_p11  ;;  %p635_p4 = scmp.lt.u32.totalorder %s626_s29, %s812_s24 }
  0x16   : > { %p634_p3 = por %p633_p2, %p632_p1 }
  0x17   : > { %p630_p0 = pneg %p629_p13 }
  0x18   : > { %p636_p5 = por %p635_p4, %p634_p3 }
  0x1a   : > { %p637_p6 = pnand %p636_p5, %p630_p0 }
  0x1c   : > { %640 = shalt.err (!%p637_p6)
}
  0x1d   : > { %s641_s7 = scalar_lea.vmem %s816_s26, 64  ;;  %s742_s8 = smov [#allocation6]  }
  0x1e   : > { %p642_p11 = scmp.ne.s32.totalorder %s816_s26, %s641_s7  ;;  %s646_s9 = sshll.u32 %s742_s8, 4  ;;  %s647_s9 = int_to_ptr.vmem [resolvable:$false] %s646_s9 }
  0x1f   : > { %s648_s15 = scalar_lea.vmem %s647_s9, 128  ;;  %p649_p10 = scmp.lt.s32.totalorder %s816_s26, %s647_s9 }
  0x20   : > { %p644_p13 = pnand %p642_p11, %p628_p12  ;;  %p650_p1 = scmp.lt.s32.totalorder %s648_s15, %s641_s7 }
  0x22   : > { %p645_p9 = pneg %p644_p13  ;;  %p651_p2 = por %p650_p1, %p649_p10 }
  0x24   : > { %p652_p3 = pnand %p651_p2, %p645_p9 }
  0x26   : > { %655 = shalt.err (!%p652_p3)
}
  0x27   : > { %570 = dma.hbm_to_vmem [thread:$0]  (!%p818_p8), %s812_s24, 64, %s816_s26, %s111_s28  }
  0x28   : > { %p969_p0 = scmp.lt.s32.totalorder %s740_s12, 5  ;;  %p970_p4 = scmp.ge.s32.totalorder %s740_s12, 1 }
  0x29   : > { %s863_s25 = scalar_lea.hbm %s964_s1, %s553_s21  ;;  %s133_s29 = scalar_lea.vmem [#allocation9], %s531_s20 }
  0x2a   : > { %p854_p5 = pnand %p970_p4, %p969_p0  ;;  %s141_s30 = sshll.u32 %s133_s29, 4  ;;  %s142_s30 = int_to_ptr.vmem [resolvable:$true] %s141_s30 }
  0x2b   : > { %s130_s24 = scalar_lea.sflag [#allocation10], %s803_s19  ;;  %s656_s26 = scalar_lea.hbm %s863_s25, 64 }
  0x2c   : > { %s971_s16 = scalar_select %p854_p5, 1, 0 }
  0x2d   : > { %p657_p9 = scmp.ne.s32.totalorder %s863_s25, %s656_s26  ;;  %s661_s21 = scalar_lea.hbm %s964_s1, 256 }
  0x2e   : > { %p662_p11 = scmp.lt.u32.totalorder %s863_s25, %s964_s1  ;;  %p663_p13 = scmp.lt.u32.totalorder %s661_s21, %s656_s26 }
  0x2f   : > { %p659_p10 = pnand %p657_p9, %p628_p12  ;;  %p665_p2 = scmp.lt.u32.totalorder %s656_s26, %s863_s25 }
  0x30   : > { %p664_p1 = por %p663_p13, %p662_p11 }
  0x31   : > { %p660_p6 = pneg %p659_p10 }
  0x32   : > { %p666_p3 = por %p665_p2, %p664_p1 }
  0x34   : > { %p667_p0 = pnand %p666_p3, %p660_p6 }
  0x36   : > { %670 = shalt.err (!%p667_p0)
}
  0x37   : > { %s671_s19 = scalar_lea.vmem %s142_s30, 64  ;;  %s743_s20 = smov [#allocation9]  }
  0x38   : > { %p672_p4 = scmp.ne.s32.totalorder %s142_s30, %s671_s19  ;;  %s676_s5 = sshll.u32 %s743_s20, 4  ;;  %s677_s5 = int_to_ptr.vmem [resolvable:$false] %s676_s5 }
  0x39   : > { %s678_s6 = scalar_lea.vmem %s677_s5, 128  ;;  %p679_p7 = scmp.lt.s32.totalorder %s142_s30, %s677_s5 }
  0x3a   : > { %p674_p9 = pnand %p672_p4, %p628_p12  ;;  %p680_p5 = scmp.lt.s32.totalorder %s678_s6, %s671_s19 }
  0x3c   : > { %p675_p10 = pneg %p674_p9  ;;  %p681_p11 = por %p680_p5, %p679_p7 }
  0x3e   : > { %p682_p13 = pnand %p681_p11, %p675_p10 }
  0x40   : > { %685 = shalt.err (!%p682_p13)
}
  0x41   : > { %573 = dma.hbm_to_vmem [thread:$0]  (!%p818_p8), %s863_s25, 64, %s142_s30, %s130_s24  }
  0x42   : > { %p972_p6 = scmp.ne.s32.totalorder %s971_s16, 0 }
  0x43   : > { %s152_s7 = sand.u32 (!%p972_p6), 1, %s732_s10   ;;  %p973_p12 = scmp.ne.s32.totalorder (!%p972_p6), %s967_s18, 0 }
  0x44   : > { %150 = sbr.rel (%p972_p6) target bundleno = 541 (0x21d), region = 28  ;;  %s538_s8 = sshll.u32 (!%p972_p6), %s152_s7, 2 }
  0x45   : > { %s153_s9 = scalar_lea.sflag (!%p972_p6), [#allocation7], %s152_s7  ;;  %s156_s15 = scalar_lea.vmem (!%p972_p6), [#allocation6], %s538_s8 }
  0x4b   : > { %715 = dma.done.wait (%p973_p12), %s153_s9, 64  }
  0x4c   : > { %717 = vsyncadd (%p973_p12), %s153_s9, 4294967232  ;;  %s162_s22 = scalar_lea.sflag [#allocation10], %s152_s7  ;;  %s165_s23 = scalar_lea.vmem [#allocation9], %s538_s8 }
  0x4d   : > { %719 = dma.done.wait (%p973_p12), %s162_s22, 64  }
  0x4e   : > { %721 = vsyncadd (%p973_p12), %s162_s22, 4294967232  ;;  %p540_p7 = scmp.ne.s32.totalorder %s781_s13, 0 }
  0x4f   : > { %v744_v0 = vmov (!%p540_p7), 0.0  }
  0x50   : > { %191 = sbr.rel (%p540_p7) target bundleno = 87 (0x57), region = 40  ;;  %192 = vst [vmem:[#allocation2] sm:$0xf] (!%p540_p7), %v744_v0  ;;  %193 = vst [vmem:[#allocation3] sm:$0xf] (!%p540_p7), %v744_v0 }
  0x51   : > { %194 = vst [vmem:[#allocation4] sm:$0xf] (!%p540_p7), %v744_v0  ;;  %195 = vst [vmem:[#allocation5] sm:$0xf] (!%p540_p7), %v744_v0 }
  0x57 PF: > { %s541_s27 = sshll.u32 %s781_s13, 8  ;;  %v199_v1 = vlaneseq  ;;  %v542_v2 = vld.sshfl [vmem:[%s156_s15] sm:$0x33 pattern:$0x76325410]  ;;  %p544_p8 = scmp.ne.s32.totalorder %s781_s13, 3 }
  0x58   : > { %v202_v3 = vstv %s541_s27  ;;  %v543_v5 = vld.sshfl [vmem:[%s165_s23] sm:$0x33 pattern:$0x76325410]  ;;  %v745_v6 = vmov 1983009808   ;;  %v215_v10 = vcombine.high %v542_v2, %v542_v2 }
  0x59   : > { %v200_v4 = vand.u32 127, %v199_v1  ;;  %v288_v7 = vunpack.c.l.s4 %v745_v6  ;;  %v291_v12 = vshrl.u32 %v199_v1, 7  ;;  %v228_v14 = vcombine.high %v543_v5, %v543_v5  ;;  %v327_v26 = vld [vmem:[#allocation5] sm:$0xf]  ;;  %v313_v6 = vld [vmem:[#allocation4] sm:$0xf] }
  0x5a   : > { %vm357_vm6 = vcmask (!%p544_p8), 1041408   ;;  %vm430_vm7 = vcmask (!%p544_p8), 1024  }
  0x5b   : > { %v201_v8 = vadd.s32 128, %v200_v4  ;;  %v900_v9 = vadd.s32 %v202_v3, %v200_v4  ;;  %v289_v11 = vunpack.c.0.s8 %v288_v7  ;;  %v283_v7 = vld [vmem:[#allocation2] sm:$0xf] }
  0x5d   : > { %v902_v13 = vadd.s32 %v202_v3, %v201_v8  ;;  %vm205_vm0 = vcmp.lt.s32.totalorder %v900_v9, 1024  ;;  %v910_v18 = vsub.s32 %v289_v11, %v291_v12  ;;  %v297_v9 = vld [vmem:[#allocation3] sm:$0xf] }
  0x5e   : > { %v218_v15 = vsel %vm205_vm0, %v542_v2, 0.0  ;;  %v231_v19 = vsel %vm205_vm0, %v543_v5, 0.0 }
  0x5f   : > { %vm206_vm1 = vcmp.lt.s32.totalorder %v902_v13, 1024  ;;  %v233_v16 = vand.u32 2147483647, %v218_v15  ;;  %v241_v37 = vmax.f32 %v218_v15, 0.0  ;;  %v243_v38 = vmul.f32 %v231_v19, %v218_v15 }
  0x60   : > { %v219_v17 = vsel %vm206_vm1, %v215_v10, 0.0  ;;  %v232_v20 = vsel %vm206_vm1, %v228_v14, 0.0  ;;  %vm273_vm3 = vcmp.ge.f32.partialorder %v218_v15, 0.0 }
  0x61   : > { %v234_v21 = vand.u32 2147483647, %v219_v17  ;;  %v235_v22 = vsub.f32 0.0, %v233_v16  ;;  %v330_v23 = vcombine.low %v231_v19, %v232_v20  ;;  %v242_v41 = vmax.f32 %v219_v17, 0.0 }
  0x62   : > { %v244_v42 = vmul.f32 %v232_v20, %v219_v17  ;;  %v245_v46 = vsub.f32 %v241_v37, %v243_v38  ;;  %vm274_vm5 = vcmp.ge.f32.partialorder %v219_v17, 0.0 }
  0x63   : > { %v236_v24 = vsub.f32 0.0, %v234_v21  ;;  %v237_v25 = vmul.f32 1.442695, %v235_v22  ;;  %v337_v27 = vrot.slane %v330_v23, %v910_v18 }
  0x64   : > { %v246_v51 = vsub.f32 %v242_v41, %v244_v42 }
  0x65   : > { %612 = vpow2.f32 %v237_v25  ;;  %v239_v28 = vmul.f32 1.442695, %v236_v24  ;;  %v339_v29 = vadd.f32 %v337_v27, %v327_v26 }
  0x67   : > { %614 = vpow2.f32 %v239_v28  ;;  %340 = vst [vmem:[#allocation5] sm:$0xf] %v339_v29 }
  0x6f   : > { %v613_v30 = vpop.eup %612 }
  0x70   : > { %v247_v31 = vadd.f32 1.0, %v613_v30  ;;  %v250_v34 = vmul.f32 -0.5, %v613_v30  ;;  %v253_v39 = vand.u32 2147483647, %v613_v30 }
  0x71   : > { %v615_v32 = vpop.eup %614 }
  0x72   : > { %616 = vlog2.f32 %v247_v31  ;;  %v256_v33 = vadd.f32 1.0, %v615_v32  ;;  %v259_v35 = vmul.f32 -0.5, %v615_v32  ;;  %v251_v36 = vadd.f32 1.0, %v250_v34 }
  0x73   : > { %618 = vrcp.f32 %v247_v31  ;;  %v262_v43 = vand.u32 2147483647, %v615_v32  ;;  %vm254_vm2 = vcmp.lt.f32.partialorder %v253_v39, 0.0004427343 }
  0x74   : > { %620 = vlog2.f32 %v256_v33  ;;  %v260_v40 = vadd.f32 1.0, %v259_v35  ;;  %v252_v44 = vmul.f32 %v613_v30, %v251_v36 }
  0x75   : > { %622 = vrcp.f32 %v256_v33  ;;  %vm263_vm4 = vcmp.lt.f32.partialorder %v262_v43, 0.0004427343 }
  0x76   : > { %v261_v49 = vmul.f32 %v615_v32, %v260_v40 }
  0x7c   : > { %v617_v45 = vpop.eup %616 }
  0x7d   : > { %v619_v47 = vpop.eup %618  ;;  %v249_v48 = vmul.f32 0.6931472, %v617_v45 }
  0x7e   : > { %v621_v50 = vpop.eup %620  ;;  %v275_v52 = vmul.f32 %v619_v47, %v613_v30 }
  0x7f   : > { %v623_v53 = vpop.eup %622  ;;  %v255_v54 = vsel %vm254_vm2, %v252_v44, %v249_v48  ;;  %v258_v55 = vmul.f32 0.6931472, %v621_v50 }
  0x80   : > { %v265_v56 = vadd.f32 %v255_v54, %v245_v46  ;;  %v276_v57 = vmul.f32 %v623_v53, %v615_v32  ;;  %v277_v58 = vsel %vm273_vm3, %v619_v47, %v275_v52 }
  0x81   : > { %v264_v59 = vsel %vm263_vm4, %v261_v49, %v258_v55  ;;  %v281_v60 = vsel %vm205_vm0, %v277_v58, 0.0 }
  0x82   : > { %v266_v61 = vadd.f32 %v264_v59, %v246_v51  ;;  %v279_v62 = vsel %vm205_vm0, %v265_v56, 0.0  ;;  %v278_v63 = vsel %vm274_vm5, %v623_v53, %v276_v57  ;;  %v298_v0 = vmul.f32 %v281_v60, %v231_v19 }
  0x83   : > { %v282_v1 = vsel %vm206_vm1, %v278_v63, 0.0 }
  0x84   : > { %v280_v2 = vsel %vm206_vm1, %v266_v61, 0.0  ;;  %v299_v3 = vmul.f32 %v282_v1, %v232_v20  ;;  %v316_v4 = vcombine.low %v281_v60, %v282_v1  ;;  %v548_v20 = vld.sshfl [vmem:[#allocation5] sm:$0x33 pattern:$0x76325410] (!%p544_p8) }
  0x85   : > { %v286_v5 = vcombine.low %v279_v62, %v280_v2  ;;  %v416_v21 = vcombine.high (!%p544_p8), %v548_v20, %v548_v20 }
  0x86   : > { %v302_v8 = vcombine.low %v298_v0, %v299_v3  ;;  %v323_v10 = vrot.slane %v316_v4, %v910_v18  ;;  %344 = sbr.rel (%p544_p8) target bundleno = 526 (0x20e), region = 44 }
  0x87   : > { %v293_v11 = vrot.slane %v286_v5, %v910_v18  ;;  %v420_v27 = vsel (!%p544_p8), %vm357_vm6, %v416_v21, 0.0 }
  0x88   : > { %v309_v12 = vrot.slane %v302_v8, %v910_v18  ;;  %v325_v14 = vadd.f32 %v323_v10, %v313_v6  ;;  %v419_v18 = vsel (!%p544_p8), %vm357_vm6, %v548_v20, 0.0 }
  0x89   : > { %v295_v15 = vadd.f32 %v293_v11, %v283_v7  ;;  %v421_v29 = vadd.f32 (!%p544_p8), %v420_v27, %v419_v18 }
  0x8a   : > { %v311_v16 = vadd.f32 %v309_v12, %v297_v9  ;;  %326 = vst [vmem:[#allocation4] sm:$0xf] %v325_v14 }
  0x8b   : > { %296 = vst [vmem:[#allocation2] sm:$0xf] %v295_v15 }
  0x8c   : > { %312 = vst [vmem:[#allocation3] sm:$0xf] %v311_v16 }
  0x91   : > { %v547_v13 = vld.sshfl [vmem:[#allocation4] sm:$0x33 pattern:$0x76325410] }
  0x92   : > { %v399_v17 = vcombine.high %v547_v13, %v547_v13  ;;  %v402_v19 = vsel %vm357_vm6, %v547_v13, 0.0  ;;  %v545_v31 = vld.sshfl [vmem:[#allocation2] sm:$0x33 pattern:$0x76325410] }
  0x93   : > { %v546_v22 = vld.sshfl [vmem:[#allocation3] sm:$0x33 pattern:$0x76325410]  ;;  %v354_v32 = vcombine.high %v545_v31, %v545_v31  ;;  %v358_v33 = vsel %vm357_vm6, %v545_v31, 0.0 }
  0x94   : > { %v403_v23 = vsel %vm357_vm6, %v399_v17, 0.0  ;;  %v382_v24 = vcombine.high %v546_v22, %v546_v22  ;;  %v385_v25 = vsel %vm357_vm6, %v546_v22, 0.0 }
  0x95   : > { %v404_v26 = vadd.f32 %v403_v23, %v402_v19  ;;  %v359_v34 = vsel %vm357_vm6, %v354_v32, 0.0 }
  0x96   : > { %v386_v28 = vsel %vm357_vm6, %v382_v24, 0.0  ;;  %v360_v35 = vadd.f32 %v359_v34, %v358_v33 }
  0x97   : > { %405 = vadd.xlane.f32.xlu0 %v404_v26  ;;  %v387_v30 = vadd.f32 %v386_v28, %v385_v25 }
  0x99   : > { %388 = vadd.xlane.f32.xlu1 %v387_v30 }
  0x9b   : > { %422 = vadd.xlane.f32.xlu0 %v421_v29 }
  0x9d   : > { %361 = vadd.xlane.f32.xlu1 %v360_v35 }
 0x124   : > { %v406_v36 = vpop.xlane.xlu0 %405 }
 0x126   : > { %v389_v40 = vpop.xlane.xlu1 %388 }
 0x127   : > { %v424_v41 = vmul.f32 2.0, %v389_v40 }
 0x128   : > { %v423_v37 = vpop.xlane.xlu0 %422 }
 0x129   : > { %v426_v38 = vadd.f32 %v423_v37, %v406_v36  ;;  %v425_v42 = vadd.f32 1e-05, %v424_v41 }
 0x12a   : > { %v362_v46 = vpop.xlane.xlu1 %361 }
 0x12b   : > { %v427_v39 = vadd.f32 1e-05, %v426_v38  ;;  %v363_v47 = vrot.slane %v362_v46, 4 }
 0x12d   : > { %624 = vrcp.f32 %v427_v39  ;;  %v364_v48 = vadd.f32 %v363_v47, %v362_v46 }
 0x12f   : > { %v365_v49 = vrot.slane %v364_v48, 2 }
 0x131   : > { %v366_v50 = vadd.f32 %v365_v49, %v364_v48 }
 0x133   : > { %v367_v51 = vrot.slane %v366_v50, 1 }
 0x135   : > { %v368_v52 = vadd.f32 %v367_v51, %v366_v50 }
 0x137   : > { %v625_v43 = vpop.eup %624  ;;  %555 = vpush %v368_v52 }
 0x138   : > { %v429_v44 = vmul.f32 %v625_v43, %v425_v42 }
 0x13a   : > { %v431_v45 = vsel %vm430_vm7, %v429_v44, 0.0 }
 0x13b   : > { %432 = vadd.xlane.f32.xlu0 %v431_v45 }
 0x168   : > { %s556_s18 = spop %555 }
 0x169   : > { %s372_s16 = smul.f32 0.00048828125, %s556_s18 }
 0x16b   : > { %s445_s30 = smul.f32 0.5, %s372_s16 }
 0x1c8   : > { %v433_v53 = vpop.xlane.xlu0 %432 }
 0x1c9   : > { %v434_v54 = vrot.slane %v433_v53, 4 }
 0x1cb   : > { %v435_v55 = vadd.f32 %v434_v54, %v433_v53 }
 0x1cd   : > { %v436_v56 = vrot.slane %v435_v55, 2 }
 0x1cf   : > { %v437_v57 = vadd.f32 %v436_v56, %v435_v55 }
 0x1d1   : > { %v438_v58 = vrot.slane %v437_v57, 1 }
 0x1d3   : > { %v439_v59 = vadd.f32 %v438_v58, %v437_v57 }
 0x1d5   : > { %557 = vpush %v439_v59 }
 0x206   : > { %s558_s25 = spop %557 }
 0x207   : > { %s443_s29 = smul.f32 0.5, %s558_s25 }
 0x209   : > { %s444_s24 = ssub.f32 1.0, %s443_s29 }
 0x20b   : > { %s446_s26 = sadd.f32 %s445_s30, %s444_s24 }
 0x20d   : > { %448 = sst [smem:[#allocation11]] %s446_s26 }
 0x20e PF: > { %p575_p5 = scmp.eq.s32.totalorder %s781_s13, 3  ;;  %s686_s21 = scalar_lea.hbm %s965_s2, 16 }
 0x20f   : > { %p687_p1 = scmp.ne.s32.totalorder %s965_s2, %s686_s21  ;;  %p692_p0 = scmp.lt.u32.totalorder %s686_s21, %s965_s2 }
 0x211   : > { %p688_p2 = pnand %p687_p1, %p575_p5 }
 0x213   : > { %p689_p3 = pneg %p688_p2 }
 0x215   : > { %p694_p4 = pnand %p692_p0, %p689_p3 }
 0x217   : > { %697 = shalt.err (!%p694_p4)
}
 0x218   : > { %s746_s5 = smov [#allocation11]  }
 0x219   : > { %564 = dma.smem_to_hbm (%p575_p5), %s746_s5, 16, %s965_s2, [#allocation8]  }
 0x21a   : > { %723 = dma.done.wait (%p575_p5), [#allocation8], 16  }
 0x21b   : > { %725 = vsyncadd (%p575_p5), [#allocation8], 4294967280 }
 0x21c   : > { %462 = sfence }
 0x21d PF: > { %p16_p9 = scmp.ge.s32.totalorder %s784_s14, 6   ;;  %s974_s9 = smov %s732_s10 }
 0x21e   : > { %s975_s10 = smov %s736_s11  ;;  %s976_s11 = smov %s794_s17 }
 0x21f   : > { %s977_s12 = smov %s784_s14  ;;  %18 = sbr.rel (!%p16_p9) target bundleno = 6 (0x6), region = 87 }
 0x226   :  { %468 = vsyncpa [#allocation7], 1 }
 0x227   :  { %470 = vsyncpa [#allocation7 + $0x1], 1 }
 0x228   :  { %471 = vsyncpa [#allocation10], 1 }
 0x229   :  { %473 = vsyncpa [#allocation10 + $0x1], 1 }
 0x22a   :  { %474 = vsyncpa [#allocation8], 1 }
 0x22b   :  { %476 = vsyncpa [#allocation8 + $0x1], 1 }

</bundles_post_ra>
